<compile_context>
chip_gen: v6e
topology: v6e:2x2x1
jax: 0.10.0
libtpu: 0.0.40
codegen_flags: <defaults>
</compile_context>

<pallas_src>
import jax
import jax.numpy as jnp
from jax.experimental import pallas as pl
from jax.experimental.pallas import tpu as pltpu


def _round_up(x: int, m: int) -> int:
    return ((x + m - 1) // m) * m


def similarity_kernel(enc_ref, dec_ref, out_ref, acc_ref):
    # enc_ref: (TILE_S, TILE_D) encoder tile
    # dec_ref: (1, TILE_D)      decoder chunk
    # out_ref: (1, TILE_S)      lane-dense output row (same block across k)
    # acc_ref: (1, TILE_S) f32  VMEM accumulator, resident across the k axis
    k = pl.program_id(1)

    @pl.when(k == 0)
    def _():
        acc_ref[...] = jnp.zeros_like(acc_ref)

    enc = enc_ref[...].astype(jnp.float32)
    dec = dec_ref[...].astype(jnp.float32)            # broadcasts over TILE_S rows
    acc_ref[...] += jnp.sum(enc * dec, axis=-1)[None, :]

    @pl.when(k == pl.num_programs(1) - 1)
    def _():
        out_ref[...] = acc_ref[...].astype(out_ref.dtype)


def _choose_tiling(S: int, D: int, itemsize: int):
    """Returns (tile_s, s_pad, tile_d, d_pad).

    Keeps a single double-buffered encoder tile pair around ~12 MiB so the
    kernel fits the scoped-VMEM budget on every generation (incl. v7x's
    64 MiB physical VMEM) while staying large enough to reach the HBM
    roofline (>= 128 rows / lane-aligned D chunks).
    """
    enc_budget = 6 * 1024 * 1024  # per buffer (x2 for double buffering)

    # D (reduction) tiling: keep full-width rows when cheap, otherwise chunk
    # the hidden dimension in lane-aligned pieces and accumulate in VMEM.
    if D <= 4096:
        tile_d, d_pad = D, D                      # block dim == full dim (legal)
    else:
        tile_d = 2048                             # multiple of 128
        d_pad = _round_up(D, tile_d)

    # S tiling under the VMEM budget.
    max_rows = max(8, enc_budget // (tile_d * itemsize))
    s8 = _round_up(S, 8)
    if s8 <= max_rows and s8 <= 4096:
        tile_s, s_pad = s8, s8                    # single tile covers everything
    else:
        tile_s = max(128, min(2048, (max_rows // 128) * 128))
        s_pad = _round_up(S, tile_s)
    return tile_s, s_pad, tile_d, d_pad


def similarity1(encoder_states: jax.Array, decoder_state: jax.Array) -> jax.Array:
    S, D = encoder_states.shape
    itemsize = jnp.dtype(encoder_states.dtype).itemsize
    tile_s, s_pad, tile_d, d_pad = _choose_tiling(S, D, itemsize)

    enc = encoder_states
    dec = decoder_state
    if s_pad != S or d_pad != D:
        # Zero rows/cols contribute zero to the dot products and are sliced off.
        enc = jnp.pad(enc, ((0, s_pad - S), (0, d_pad - D)))
    if d_pad != D:
        dec = jnp.pad(dec, ((0, d_pad - D),))
    dec2d = dec.reshape(1, d_pad)

    out_itemsize = itemsize
    # 2x (double buffer) enc tiles + dec chunks + out tiles + f32 accumulator.
    need = (2 * tile_s * tile_d * itemsize
            + 2 * tile_d * itemsize
            + 2 * tile_s * out_itemsize
            + tile_s * 4)
    vmem_limit = int(max(32 * 1024 * 1024, need + (8 << 20)))

    out = pl.pallas_call(
        similarity_kernel,
        out_shape=jax.ShapeDtypeStruct((1, s_pad), encoder_states.dtype),
        grid=(s_pad // tile_s, d_pad // tile_d),
        in_specs=[
            pl.BlockSpec((tile_s, tile_d), lambda i, k: (i, k)),
            pl.BlockSpec((1, tile_d), lambda i, k: (0, k)),
        ],
        out_specs=pl.BlockSpec((1, tile_s), lambda i, k: (0, i)),
        scratch_shapes=[pltpu.VMEM((1, tile_s), jnp.float32)],
        compiler_params=pltpu.CompilerParams(
            dimension_semantics=("parallel", "arbitrary"),
            vmem_limit_bytes=vmem_limit,
        ),
    )(enc, dec2d)
    return out[0, :S]


if __name__ == "__main__":
    key = jax.random.PRNGKey(0)
    k_enc, k_dec = jax.random.split(key)

    # Small shapes consistent with the module's (seq, hidden) x (hidden,) matvec.
    S, D = 8, 32
    encoder_states = jax.random.normal(k_enc, (S, D), dtype=jnp.float32)
    decoder_state = jax.random.normal(k_dec, (D,), dtype=jnp.float32)

    sim = jax.block_until_ready(similarity1(encoder_states, decoder_state))
    ref = encoder_states @ decoder_state
    assert sim.shape == (S,)
    assert jnp.allclose(sim, ref, atol=1e-5, rtol=1e-5)

    # Multi-S-tile / padded / lane-dense path.
    k_enc2, k_dec2 = jax.random.split(jax.random.PRNGKey(1))
    S2, D2 = 3000, 256
    enc2 = jax.random.normal(k_enc2, (S2, D2), dtype=jnp.float32)
    dec2 = jax.random.normal(k_dec2, (D2,), dtype=jnp.float32)
    sim2 = jax.block_until_ready(similarity1(enc2, dec2))
    ref2 = enc2 @ dec2
    assert sim2.shape == (S2,)
    assert jnp.allclose(sim2, ref2, atol=1e-3, rtol=1e-4)

    # Large-D path: chunked reduction axis with the VMEM f32 accumulator.
    k_enc3, k_dec3 = jax.random.split(jax.random.PRNGKey(2))
    S3, D3 = 512, 5000
    enc3 = jax.random.normal(k_enc3, (S3, D3), dtype=jnp.float32)
    dec3 = jax.random.normal(k_dec3, (D3,), dtype=jnp.float32)
    sim3 = jax.block_until_ready(similarity1(enc3, dec3))
    ref3 = enc3 @ dec3
    assert sim3.shape == (S3,)
    assert jnp.allclose(sim3, ref3, atol=1e-2, rtol=1e-4)

    print("KERNEL_OK")
</pallas_src>

<mosaic_0001>
module attributes {stable_mosaic.version = 11 : i64} {
  func.func @similarity_kernel(%arg0: i32, %arg1: i32, %arg2: memref<8x32xf32, #tpu.memory_space<vmem>>, %arg3: memref<1x32xf32, #tpu.memory_space<vmem>>, %arg4: memref<1x8xf32, #tpu.memory_space<vmem>>, %arg5: memref<1x8xf32, #tpu.memory_space<vmem>>) attributes {dimension_semantics = [#tpu.dimension_semantics<parallel>, #tpu.dimension_semantics<arbitrary>], iteration_bounds = array<i64: 1, 1>, scalar_prefetch = 0 : i64, scratch_operands = 1 : i64, tpu.core_type = #tpu.core_type<tc>, window_params = [{transform_indices = @transform_0, window_bounds = array<i64: 8, 32>}, {transform_indices = @transform_1, window_bounds = array<i64: 1, 32>}, {transform_indices = @transform_2, window_bounds = array<i64: 1, 8>}]} {
    %c0_i32 = arith.constant 0 : i32
    %0 = arith.cmpi eq, %arg1, %c0_i32 : i32
    %1 = arith.extui %0 : i1 to i32
    %c0_i32_0 = arith.constant 0 : i32
    %2 = arith.cmpi ne, %1, %c0_i32_0 : i32
    scf.if %2 {
      %cst_10 = arith.constant 0.000000e+00 : f32
      %15 = vector.broadcast %cst_10 : f32 to vector<1x8xf32>
      %c0_11 = arith.constant 0 : index
      %c0_12 = arith.constant 0 : index
      %16 = vector.load %arg5[%c0_11, %c0_12] : memref<1x8xf32, #tpu.memory_space<vmem>>, vector<1x8xf32>
      tpu.vector_store %arg5[%c0_11, %c0_12], %15 {strides = array<i32>} : memref<1x8xf32, #tpu.memory_space<vmem>>, vector<1x8xf32>,
    } else {
    }
    %c0 = arith.constant 0 : index
    %c0_1 = arith.constant 0 : index
    %3 = vector.load %arg2[%c0, %c0_1] : memref<8x32xf32, #tpu.memory_space<vmem>>, vector<8x32xf32>
    %c0_2 = arith.constant 0 : index
    %c0_3 = arith.constant 0 : index
    %4 = vector.load %arg3[%c0_2, %c0_3] : memref<1x32xf32, #tpu.memory_space<vmem>>, vector<1x32xf32>
    %c0_4 = arith.constant 0 : index
    %c0_5 = arith.constant 0 : index
    %5 = vector.load %arg5[%c0_4, %c0_5] : memref<1x8xf32, #tpu.memory_space<vmem>>, vector<1x8xf32>
    %6 = vector.broadcast %4 : vector<1x32xf32> to vector<8x32xf32>
    %7 = arith.mulf %3, %6 : vector<8x32xf32>
    %cst = arith.constant dense<0.000000e+00> : vector<8xf32>
    %8 = vector.multi_reduction <add>, %7, %cst [1] : vector<8x32xf32> to vector<8xf32>
    %9 = vector.shape_cast %8 : vector<8xf32> to vector<1x8xf32>
    %10 = arith.addf %5, %9 : vector<1x8xf32>
    %c0_6 = arith.constant 0 : index
    %c0_7 = arith.constant 0 : index
    %11 = vector.load %arg5[%c0_6, %c0_7] : memref<1x8xf32, #tpu.memory_space<vmem>>, vector<1x8xf32>
    tpu.vector_store %arg5[%c0_6, %c0_7], %10 {strides = array<i32>} : memref<1x8xf32, #tpu.memory_space<vmem>>, vector<1x8xf32>,
    %c0_i32_8 = arith.constant 0 : i32
    %12 = arith.cmpi eq, %arg1, %c0_i32_8 : i32
    %13 = arith.extui %12 : i1 to i32
    %c0_i32_9 = arith.constant 0 : i32
    %14 = arith.cmpi ne, %13, %c0_i32_9 : i32
    scf.if %14 {
      %c0_10 = arith.constant 0 : index
      %c0_11 = arith.constant 0 : index
      %15 = vector.load %arg5[%c0_10, %c0_11] : memref<1x8xf32, #tpu.memory_space<vmem>>, vector<1x8xf32>
      %c0_12 = arith.constant 0 : index
      %c0_13 = arith.constant 0 : index
      %16 = vector.load %arg4[%c0_12, %c0_13] : memref<1x8xf32, #tpu.memory_space<vmem>>, vector<1x8xf32>
      tpu.vector_store %arg4[%c0_12, %c0_13], %15 {strides = array<i32>} : memref<1x8xf32, #tpu.memory_space<vmem>>, vector<1x8xf32>,
    } else {
    }
    return
  }
  func.func @transform_0(%arg0: i32, %arg1: i32) -> (i32, i32) {
    %c0_i32 = arith.constant 0 : i32
    return %arg0, %arg1 : i32, i32
  }
  func.func @transform_1(%arg0: i32, %arg1: i32) -> (i32, i32) {
    %c0_i32 = arith.constant 0 : i32
    %c0_i32_0 = arith.constant 0 : i32
    return %c0_i32, %arg1 : i32, i32
  }
  func.func @transform_2(%arg0: i32, %arg1: i32) -> (i32, i32) {
    %c0_i32 = arith.constant 0 : i32
    %c0_i32_0 = arith.constant 0 : i32
    return %c0_i32, %arg0 : i32, i32
  }
}

</mosaic_0001>

<bundles_post_ra>
// kernel: tpu_custom_call.1
= control target key start
LH: loop header
LB: loop body
LE: loop exit
PB: predicated region body
PF: predicated region fallthrough
CT: control target
= control target key end

     0   :  { %7 = vsyncpa [#allocation4], 0  ;;  %s256_s0 = inlined_call_operand.hbm [shape: f32[8,32], index: 0, kind: input, shape index: {}]   ;;  %s257_s1 = inlined_call_operand.vmem [shape: f32[1,32], index: 1, kind: input, shape index: {}]   ;;  %s258_s2 = inlined_call_operand.hbm [shape: f32[1,8], index: 2, kind: output, shape index: {}]  }
   0x1   :  { %8 = vsyncpa [#allocation5], 0  ;;  %s224_s9 = smov [#allocation3]  }
   0x2   :  { %s15_s10 = sshll.u32 %s224_s9, 4  ;;  %s16_s10 = int_to_ptr.vmem [resolvable:$true] %s15_s10 }
   0x3   :  { %s188_s11 = scalar_lea.vmem %s16_s10, 128  ;;  %p193_p1 = scmp.lt.s32.totalorder %s16_s10, %s16_s10 }
   0x4   :  { %p189_p0 = scmp.ne.s32.totalorder %s16_s10, %s188_s11  ;;  %p194_p2 = scmp.lt.s32.totalorder %s188_s11, %s188_s11 }
   0x6   :  { %p195_p3 = por %p194_p2, %p193_p1 }
   0x8   :  { %p196_p4 = pnand %p195_p3, %p189_p0 }
   0xa   :  { %199 = shalt.err (!%p196_p4)
}
   0xb   :  { %18 = dma.hbm_to_vmem [thread:$0]  %s256_s0, 128, %s16_s10, [#allocation4]  }
   0xc   :  { %220 = dma.done.wait [#allocation4], 128  }
   0xd   :  { %221 = vsyncadd [#allocation4], 4294967168  ;;  %v30_v0 = vld [vmem:[#allocation3] sm:$0xff]  ;;  %v173_v1 = vld [vmem:[%s257_s1] ss:$0 sm:$0xff]  ;;  %vm40_vm0 = vcmask 261120   ;;  %v45_v5 = vlaneseq }
   0xe   :  { %v39_v2 = vmul.f32 %v173_v1, %v30_v0  ;;  %v225_v4 = vmov 0   ;;  %v226_v9 = vmov 1966171168   ;;  %vm28_vm1 = vcmask 57344   ;;  %s228_s0 = smov [#allocation6]  }
   0xf   :  { %179 = vset.pattern.permute.xlu0 %v225_v4  ;;  %v46_v6 = vshrl.u32 %v45_v5, 7  ;;  %v130_v7 = vand.u32 127, %v45_v5  ;;  %v82_v10 = vunpack.c.l.s4 %v226_v9  ;;  %v227_v40 = vmov 0.0   ;;  %s164_s1 = sshll.u32 %s228_s0, 4  ;;  %s165_s1 = int_to_ptr.vmem [resolvable:$true] %s164_s1 }
  0x10   :  { %v41_v3 = vsel %vm40_vm0, %v39_v2, 0.0  ;;  %29 = vst.msk [vmem:[#allocation2] sm:$0x1] %vm28_vm1, %v227_v40  ;;  %s200_s16 = scalar_lea.vmem %s165_s1, 16  ;;  %s204_s17 = scalar_lea.vmem %s165_s1, 32 }
  0x11   :  { %42 = vadd.xlane.f32.xlu0 %v41_v3  ;;  %v133_v8 = vsub.s32 %v130_v7, %v46_v6  ;;  %v83_v11 = vunpack.c.0.s8 %v82_v10  ;;  %v47_v12 = vsub.s32 0, %v46_v6  ;;  %v51_v13 = vsub.s32 1, %v46_v6  ;;  %p201_p5 = scmp.ne.s32.totalorder %s165_s1, %s200_s16  ;;  %p205_p6 = scmp.lt.s32.totalorder %s165_s1, %s165_s1 }
  0x12   :  { %v55_v14 = vsub.s32 2, %v46_v6  ;;  %v59_v15 = vsub.s32 3, %v46_v6  ;;  %v63_v16 = vsub.s32 4, %v46_v6  ;;  %v67_v17 = vsub.s32 5, %v46_v6  ;;  %p206_p7 = scmp.lt.s32.totalorder %s204_s17, %s200_s16 }
  0x13   :  { %v71_v18 = vsub.s32 6, %v46_v6  ;;  %v75_v19 = vsub.s32 7, %v46_v6  ;;  %v86_v21 = vsub.s32 %v83_v11, %v46_v6 }
  0x14   :  { %p207_p8 = por %p206_p7, %p205_p6 }
  0x16   :  { %p208_p9 = pnand %p207_p8, %p201_p5 }
  0x17   :  { %v32_v47 = vld [vmem:[#allocation2] sm:$0x1] }
  0x9a   :  { %v43_v20 = vpop.xlane.xlu0 %42 }
  0x9b   :  { %v48_v22 = vrot.slane %v43_v20, %v47_v12  ;;  %v52_v23 = vrot.slane %v43_v20, %v51_v13  ;;  %v56_v24 = vrot.slane %v43_v20, %v55_v14  ;;  %v60_v25 = vrot.slane %v43_v20, %v59_v15 }
  0x9c   :  { %v64_v26 = vrot.slane %v43_v20, %v63_v16  ;;  %v68_v27 = vrot.slane %v43_v20, %v67_v17  ;;  %v72_v28 = vrot.slane %v43_v20, %v71_v18  ;;  %v76_v29 = vrot.slane %v43_v20, %v75_v19 }
  0x9d   :  { %v77_v30 = vcombine.low %v48_v22, %v52_v23  ;;  %v78_v31 = vcombine.low %v56_v24, %v60_v25 }
  0x9e   :  { %v79_v32 = vcombine.low %v64_v26, %v68_v27  ;;  %v80_v33 = vcombine.low %v72_v28, %v76_v29 }
  0x9f   :  { %v87_v34 = vrot.slane %v77_v30, %v86_v21  ;;  %v94_v35 = vrot.slane %v78_v31, %v86_v21 }
  0xa0   :  { %v101_v36 = vrot.slane %v79_v32, %v86_v21  ;;  %v108_v37 = vrot.slane %v80_v33, %v86_v21 }
  0xa1   :  { %v109_v38 = vcombine.low %v87_v34, %v94_v35 }
  0xa2   :  { %v110_v39 = vcombine.low %v101_v36, %v108_v37 }
  0xa3   :  { %v117_v41 = vrot.slane %v109_v38, %v86_v21 }
  0xa4   :  { %v124_v42 = vrot.slane %v110_v39, %v86_v21 }
  0xa6   :  { %v125_v43 = vcombine.low %v117_v41, %v124_v42 }
  0xa8   :  { %127 = vperm.xlu0 %179, %v125_v43  }
 0x123   :  { %v128_v44 = vpop.permute.xlu0 %127 }
 0x124   :  { %v134_v45 = vrot.slane %v128_v44, %v133_v8 }
 0x126   :  { %v141_v46 = vrot.slane %v134_v45, %v86_v21 }
 0x128   :  { %v148_v48 = vrot.slane %v141_v46, %v86_v21 }
 0x12a   :  { %v150_v49 = vadd.f32 %v148_v48, %v32_v47 }
 0x12c   :  { %152 = vst.msk [vmem:[#allocation2] sm:$0x1] %vm28_vm1, %v150_v49 }
 0x133   :  { %v156_v50 = vld [vmem:[#allocation2] sm:$0x1] }
 0x134   :  { %157 = vst.msk [vmem:[#allocation6] sm:$0x1] %vm28_vm1, %v156_v50 }
 0x135   :  { %211 = shalt.err (!%p208_p9)
}
 0x136   :  { %167 = dma.vmem_to_hbm [thread:$0]  %s165_s1, 16, %s258_s2, [#allocation5]  }
 0x137   :  { %222 = dma.done.wait [#allocation5], 16  }
 0x138   :  { %223 = vsyncadd [#allocation5], 4294967280 }
 0x139   :  { %171 = vsyncpa [#allocation4], 1 }
 0x13a   :  { %172 = vsyncpa [#allocation5], 1 }

</bundles_post_ra>
